<compile_context>
chip_gen: v6e
topology: v6e:2x2x1
jax: 0.10.0
libtpu: 0.0.40
codegen_flags: <defaults>
</compile_context>

<pallas_src>
import jax
import jax.numpy as jnp
from jax.experimental import pallas as pl
from jax.experimental.pallas import tpu as pltpu


def _copy_kernel(x_ref, o_ref):
    # x_ref: (TC, D) (batch dim squeezed away by the BlockSpec); o_ref: (TC, D).
    o_ref[...] = x_ref[...]


def _reference(x):
    B, C, D = x.shape
    return jnp.transpose(x, (1, 0, 2)).reshape(C, B * D)


def redundant_reshape_pattern2(x, *, min_pallas_elems=16384,
                               vmem_tile_budget_bytes=8 * 1024 * 1024):
    """out[c, b*D + d] = x[b, c, d] -- matches the PyTorch module forward."""
    B, C, D = x.shape
    itemsize = jnp.dtype(x.dtype).itemsize

    # Fallback: tiny tensors (Pallas launch overhead dominates), a last dim
    # that is not lane-aligned (would force masked stores), or a D so large
    # that even an 8-row C tile blows the VMEM budget.
    if (x.size < min_pallas_elems
            or D % 128 != 0
            or 4 * 8 * D * itemsize > vmem_tile_budget_bytes):
        return _reference(x)

    # C tile: double-buffered input (TC, D) + output (TC, D) blocks
    #   => ~4 * TC * D * itemsize bytes of VMEM in flight.
    tc = vmem_tile_budget_bytes // (4 * D * itemsize)
    tc = max(8, min(1024, (tc // 8) * 8))
    if C <= tc:
        tc = C                      # full-extent C tile: always layout-legal

    grid = (B, pl.cdiv(C, tc))

    return pl.pallas_call(
        _copy_kernel,
        out_shape=jax.ShapeDtypeStruct((C, B * D), x.dtype),
        grid=grid,
        in_specs=[
            # (None, tc, D): batch dim squeezed; block = (C-tile, full D) of x[b].
            pl.BlockSpec((None, tc, D), lambda b, c: (b, c, 0)),
        ],
        # (tc, D) tile of the (C, B*D) output: rows [c*tc, ...),
        # columns [b*D, (b+1)*D) -> lane-dense (D % 128 == 0), unmasked stores.
        out_specs=pl.BlockSpec((tc, D), lambda b, c: (c, b)),
        compiler_params=pltpu.CompilerParams(
            dimension_semantics=("parallel", "parallel")),
        cost_estimate=pl.CostEstimate(
            flops=0, transcendentals=0,
            bytes_accessed=2 * B * C * D * itemsize),
    )(x)


if __name__ == "__main__":
    k0, k1, k2 = jax.random.split(jax.random.PRNGKey(0), 3)

    # 1) Pallas-exercising shape: small but lane-aligned and above the tiny
    #    threshold (B=2, C=128, D=128).
    B, C, D = 2, 128, 128
    x = jax.random.normal(k0, (B, C, D), dtype=jnp.float32)
    out = jax.block_until_ready(redundant_reshape_pattern2(x))
    assert out.shape == (C, B * D) and out.dtype == x.dtype
    assert jnp.allclose(out, _reference(x)), "mismatch vs reference (pallas path)"

    # 2) Non-multiple-of-8 C with a full-extent C tile (B=3, C=200, D=256).
    B2, C2, D2 = 3, 200, 256
    x2 = jax.random.normal(k1, (B2, C2, D2), dtype=jnp.float32)
    out2 = jax.block_until_ready(redundant_reshape_pattern2(x2))
    assert out2.shape == (C2, B2 * D2)
    assert jnp.allclose(out2, _reference(x2)), "mismatch vs reference (pallas path 2)"

    # 3) The module's literal example shape (2, 3, 4): tiny -> XLA fallback.
    x3 = jax.random.normal(k2, (2, 3, 4), dtype=jnp.float32)
    out3 = jax.block_until_ready(redundant_reshape_pattern2(x3))
    assert out3.shape == (3, 2 * 4)
    assert jnp.allclose(out3, _reference(x3)), "mismatch vs reference (fallback path)"

    print("KERNEL_OK")
</pallas_src>

<mosaic_0001>
module attributes {stable_mosaic.version = 11 : i64} {
  func.func @_copy_kernel(%arg0: i32, %arg1: i32, %arg2: memref<1x128x128xf32, #tpu.memory_space<vmem>>, %arg3: memref<128x128xf32, #tpu.memory_space<vmem>>) attributes {dimension_semantics = [#tpu.dimension_semantics<parallel>, #tpu.dimension_semantics<parallel>], iteration_bounds = array<i64: 2, 1>, scalar_prefetch = 0 : i64, scratch_operands = 0 : i64, tpu.core_type = #tpu.core_type<tc>, window_params = [{transform_indices = @transform_0, window_bounds = array<i64: 1, 128, 128>}, {transform_indices = @transform_1, window_bounds = array<i64: 128, 128>}]} {
    %c0 = arith.constant 0 : index
    %c0_0 = arith.constant 0 : index
    %c0_1 = arith.constant 0 : index
    %0 = vector.load %arg2[%c0, %c0_0, %c0_1] : memref<1x128x128xf32, #tpu.memory_space<vmem>>, vector<1x128x128xf32>
    %1 = vector.shape_cast %0 : vector<1x128x128xf32> to vector<128x128xf32>
    %c0_2 = arith.constant 0 : index
    %c0_3 = arith.constant 0 : index
    %2 = vector.load %arg3[%c0_2, %c0_3] : memref<128x128xf32, #tpu.memory_space<vmem>>, vector<128x128xf32>
    tpu.vector_store %arg3[%c0_2, %c0_3], %1 {strides = array<i32>} : memref<128x128xf32, #tpu.memory_space<vmem>>, vector<128x128xf32>,
    return
  }
  func.func @transform_0(%arg0: i32, %arg1: i32) -> (i32, i32, i32) {
    %c0_i32 = arith.constant 0 : i32
    %c0_i32_0 = arith.constant 0 : i32
    return %arg0, %arg1, %c0_i32 : i32, i32, i32
  }
  func.func @transform_1(%arg0: i32, %arg1: i32) -> (i32, i32) {
    %c0_i32 = arith.constant 0 : i32
    return %arg1, %arg0 : i32, i32
  }
}

</mosaic_0001>

<bundles_post_ra>
// kernel: tpu_custom_call.1
= control target key start
LH: loop header
LB: loop body
LE: loop exit
PB: predicated region body
PF: predicated region fallthrough
CT: control target
= control target key end

     0   :  { %6 = vsyncpa [#allocation3], 0  ;;  %s681_s0 = inlined_call_operand.hbm [shape: f32[2,128,128], index: 0, kind: input, shape index: {}]   ;;  %s682_s1 = inlined_call_operand.hbm [shape: f32[128,256], index: 1, kind: output, shape index: {}]  }
   0x1   :  { %8 = vsyncpa [#allocation3 + $0x1], 0 }
   0x2   :  { %9 = vsyncpa [#allocation4], 0 }
   0x3   :  { %11 = vsyncpa [#allocation4 + $0x1], 0  ;;  %s498_s6 = smov 0   ;;  %s500_s7 = smov 0  }
   0x4   :  { %s502_s8 = smov 0   ;;  %s504_s9 = smov 0  }
   0x5   :  { %s506_s10 = smov 0   ;;  %s508_s11 = smov 0  }
   0x6 LB: > { %s289_s12 = sadd.s32 4294967295, %s479_s11   ;;  %s290_s13 = sadd.s32 4294967294, %s479_s11   ;;  %s479_s11 = sphi %s508_s11, %s17_s11   ;;  %s475_s10 = sphi %s506_s10, %s693_s10   ;;  %s471_s9 = sphi %s504_s9, %s692_s9   ;;  %s467_s8 = sphi %s502_s8, %s691_s8   ;;  %s463_s7 = sphi %s500_s7, %s690_s7   ;;  %s459_s6 = sphi %s498_s6, %s689_s6  }
   0x7   : > { %s29_s14 = sadd.s32 1, %s475_s10  ;;  %s38_s15 = sadd.s32 1, %s467_s8 }
   0x8   : > { %p31_p0 = scmp.ge.s32.totalorder %s29_s14, 2  ;;  %p45_p1 = scmp.ne.s32.totalorder %s467_s8, %s463_s7 }
   0x9   : > { %p46_p2 = scmp.eq.s32.totalorder %s479_s11, 0  ;;  %p51_p3 = scmp.ne.s32.totalorder %s463_s7, %s459_s6 }
   0xa   : > { %s695_s14 = smov (%p31_p0, %s29_s14), 0  ;;  %p52_p5 = scmp.eq.s32.totalorder %s289_s12, 0 }
   0xb   : > { %p539_p4 = por %p46_p2, %p45_p1  ;;  %s33_s17 = ssub.s32 %s475_s10, %s695_s14 }
   0xc   : > { %p77_p6 = scmp.eq.s32.totalorder %s289_s12, 1  ;;  %p36_p7 = scmp.eq.s32.totalorder %s33_s17, 0 }
   0xd   : > { %p545_p8 = por %p52_p5, %p51_p3  ;;  %p83_p10 = scmp.eq.s32.totalorder %s290_s13, 1 }
   0xe   : > { %p549_p9 = por %p77_p6, %p45_p1  ;;  %p316_p13 = scmp.lt.s32.totalorder %s479_s11, 2 }
   0xf   : > { %s554_s20 = scalar_select %p36_p7, %s467_s8, %s38_s15  }
  0x10   : > { %p556_p11 = por %p83_p10, %p51_p3  ;;  %s103_s22 = sand.u32 1, %s467_s8  }
  0x11   : > { %s293_s23 = sshll.u32 %s103_s22, 7  ;;  %s303_s24 = sshll.u32 %s475_s10, 11 }
  0x12   : > { %s115_s27 = scalar_lea.hbm %s681_s0, %s303_s24  ;;  %s107_s28 = scalar_lea.vmem [#allocation2], %s293_s23 }
  0x13   : > { %s116_s29 = sshll.u32 %s107_s28, 4  ;;  %p569_p0 = pnand %p316_p13, %p539_p4  ;;  %s117_s29 = int_to_ptr.vmem [resolvable:$true] %s116_s29 }
  0x14   : > { %p296_p1 = scmp.ge.s32.totalorder %s479_s11, 1  ;;  %s104_s2 = scalar_lea.sflag [#allocation3], %s103_s22 }
  0x15   : > { %p373_p2 = pneg %p569_p0  ;;  %s384_s3 = scalar_lea.vmem %s117_s29, 2048 }
  0x16   : > { %p385_p3 = scmp.ne.s32.totalorder %s117_s29, %s384_s3  ;;  %s481_s4 = smov [#allocation2]  }
  0x17   : > { %s389_s5 = sshll.u32 %s481_s4, 4  ;;  %s390_s5 = int_to_ptr.vmem [resolvable:$false] %s389_s5 }
  0x18   : > { %p387_p5 = pnand %p385_p3, %p373_p2  ;;  %s391_s12 = scalar_lea.vmem %s390_s5, 4096 }
  0x19   : > { %p392_p7 = scmp.lt.s32.totalorder %s117_s29, %s390_s5  ;;  %p393_p10 = scmp.lt.s32.totalorder %s391_s12, %s384_s3 }
  0x1a   : > { %p388_p6 = pneg %p387_p5 }
  0x1b   : > { %p394_p12 = por %p393_p10, %p392_p7 }
  0x1d   : > { %p395_p4 = pnand %p394_p12, %p388_p6 }
  0x1f   : > { %398 = shalt.err (!%p395_p4)
}
  0x20   : > { %s482_s13 = smov 128   ;;  %s483_s15 = smov 8  }
  0x21   : > { %311 = dma.hbm_to_vmem [thread:$0]  (!%p569_p0), %s115_s27, 2048, %s117_s29, %s104_s2, %s482_s13, %s482_s13, %s483_s15  }
  0x22   : > { %p124_p13 = scmp.lt.s32.totalorder %s479_s11, 3 }
  0x24   : > { %p125_p2 = pnand %p296_p1, %p124_p13 }
  0x25   : > { %s582_s16 = sand.u32 (!%p125_p2), 1, %s463_s7  }
  0x26   : > { %128 = sbr.rel (%p125_p2) target bundleno = 70 (0x46), region = 24  ;;  %s297_s17 = sshll.u32 (!%p125_p2), %s582_s16, 7 }
  0x27   : > { %s131_s22 = scalar_lea.sflag (!%p125_p2), [#allocation3], %s582_s16  ;;  %s586_s23 = scalar_lea.vmem (!%p125_p2), [#allocation2], %s297_s17 }
  0x2b   : > { %450 = dma.done.wait (%p545_p8), %s131_s22, 2048  }
  0x2c   : > { %452 = vsyncadd (%p545_p8), %s131_s22, 4294965248  ;;  %s300_s24 = sshll.u32 %s471_s9, 7  ;;  %v155_v0 = vld [vmem:[%s586_s23] sm:$0xff]  ;;  %v156_v1 = vld [vmem:[%s586_s23 + $0x8] sm:$0xff]  ;;  %s596_s25 = scalar_lea.vmem [#allocation5], %s297_s17 }
  0x2d   : > { %v157_v2 = vld [vmem:[%s586_s23 + $0x10] sm:$0xff]  ;;  %s203_s18 = sshll.u32 %s596_s25, 4  ;;  %171 = vst [vmem:[%s596_s25] sm:$0xff] %v155_v0  ;;  %172 = vst [vmem:[%s596_s25 + $0x8] sm:$0xff] %v156_v1  ;;  %v158_v3 = vld [vmem:[%s586_s23 + $0x18] sm:$0xff]  ;;  %s614_s27 = scalar_lea.hbm %s682_s1, %s300_s24  ;;  %s622_s18 = int_to_ptr.vmem [resolvable:$true] %s203_s18 }
  0x2e   : > { %173 = vst [vmem:[%s596_s25 + $0x10] sm:$0xff] %v157_v2  ;;  %v159_v4 = vld [vmem:[%s586_s23 + $0x20] sm:$0xff]  ;;  %v160_v5 = vld [vmem:[%s586_s23 + $0x28] sm:$0xff]  ;;  %174 = vst [vmem:[%s596_s25 + $0x18] sm:$0xff] %v158_v3  ;;  %s188_s28 = scalar_lea.sflag [#allocation4], %s582_s16  ;;  %s399_s29 = scalar_lea.vmem %s622_s18, 2048 }
  0x2f   : > { %175 = vst [vmem:[%s596_s25 + $0x20] sm:$0xff] %v159_v4  ;;  %176 = vst [vmem:[%s596_s25 + $0x28] sm:$0xff] %v160_v5  ;;  %v161_v6 = vld [vmem:[%s586_s23 + $0x30] sm:$0xff]  ;;  %v162_v7 = vld [vmem:[%s586_s23 + $0x38] sm:$0xff]  ;;  %p400_p8 = scmp.ne.s32.totalorder %s622_s18, %s399_s29  ;;  %s484_s30 = smov [#allocation5]  }
  0x30   : > { %v163_v8 = vld [vmem:[%s586_s23 + $0x40] sm:$0xff]  ;;  %177 = vst [vmem:[%s596_s25 + $0x30] sm:$0xff] %v161_v6  ;;  %178 = vst [vmem:[%s596_s25 + $0x38] sm:$0xff] %v162_v7  ;;  %v164_v9 = vld [vmem:[%s586_s23 + $0x48] sm:$0xff]  ;;  %s403_s2 = sshll.u32 %s484_s30, 4  ;;  %s404_s2 = int_to_ptr.vmem [resolvable:$false] %s403_s2 }
  0x31   : > { %179 = vst [vmem:[%s596_s25 + $0x40] sm:$0xff] %v163_v8  ;;  %v165_v10 = vld [vmem:[%s586_s23 + $0x50] sm:$0xff]  ;;  %v166_v11 = vld [vmem:[%s586_s23 + $0x58] sm:$0xff]  ;;  %180 = vst [vmem:[%s596_s25 + $0x48] sm:$0xff] %v164_v9  ;;  %p401_p12 = pnand %p400_p8, %p549_p9  ;;  %s405_s3 = scalar_lea.vmem %s404_s2, 4096 }
  0x32   : > { %181 = vst [vmem:[%s596_s25 + $0x50] sm:$0xff] %v165_v10  ;;  %182 = vst [vmem:[%s596_s25 + $0x58] sm:$0xff] %v166_v11  ;;  %v167_v12 = vld [vmem:[%s586_s23 + $0x60] sm:$0xff]  ;;  %v168_v13 = vld [vmem:[%s586_s23 + $0x68] sm:$0xff]  ;;  %p406_p1 = scmp.lt.s32.totalorder %s622_s18, %s404_s2  ;;  %p407_p3 = scmp.lt.s32.totalorder %s405_s3, %s399_s29 }
  0x33   : > { %v169_v14 = vld [vmem:[%s586_s23 + $0x70] sm:$0xff]  ;;  %183 = vst [vmem:[%s596_s25 + $0x60] sm:$0xff] %v167_v12  ;;  %184 = vst [vmem:[%s596_s25 + $0x68] sm:$0xff] %v168_v13  ;;  %v170_v15 = vld [vmem:[%s586_s23 + $0x78] sm:$0xff]  ;;  %p402_p0 = pneg %p401_p12 }
  0x34   : > { %185 = vst [vmem:[%s596_s25 + $0x70] sm:$0xff] %v169_v14  ;;  %186 = vst [vmem:[%s596_s25 + $0x78] sm:$0xff] %v170_v15  ;;  %p408_p5 = por %p407_p3, %p406_p1 }
  0x36   : > { %p409_p6 = pnand %p408_p5, %p402_p0 }
  0x38   : > { %412 = shalt.err (!%p409_p6)
}
  0x39   : > { %s413_s4 = scalar_lea.hbm %s614_s27, 2048  ;;  %s417_s13 = scalar_lea.hbm %s682_s1, 4096 }
  0x3a   : > { %p414_p7 = scmp.ne.s32.totalorder %s614_s27, %s413_s4  ;;  %p418_p13 = scmp.lt.s32.totalorder %s614_s27, %s682_s1 }
  0x3b   : > { %p419_p2 = scmp.lt.s32.totalorder %s417_s13, %s413_s4 }
  0x3c   : > { %p415_p10 = pnand %p414_p7, %p549_p9 }
  0x3d   : > { %p420_p8 = por %p419_p2, %p418_p13 }
  0x3e   : > { %p416_p4 = pneg %p415_p10 }
  0x40   : > { %p421_p12 = pnand %p420_p8, %p416_p4 }
  0x42   : > { %424 = shalt.err (!%p421_p12)
}
  0x43   : > { %s485_s22 = smov 128   ;;  %s486_s23 = smov 256  }
  0x44   : > { %s487_s24 = smov 8  }
  0x45   : > { %306 = dma.vmem_to_hbm [thread:$0]  (%p549_p9), %s622_s18, 2048, %s614_s27, %s188_s28, %s485_s22, %s486_s23, %s487_s24  }
  0x46 PF: > { %s218_s25 = sand.u32 1, %s459_s6   ;;  %p688_p0 = scmp.ge.s32.totalorder %s479_s11, 2 }
  0x47   : > { %s219_s9 = scalar_lea.sflag [#allocation4], %s218_s25 }
  0x48   : > { %p313_p1 = pnand %p688_p0, %p556_p11 }
  0x4a   : > { %p314_p3 = pneg %p313_p1 }
  0x4c   : > { %454 = dma.done.wait (%p314_p3), %s219_s9, 2048  }
  0x4d   : > { %456 = vsyncadd (%p314_p3), %s219_s9, 4294965248  ;;  %s17_s11 = sadd.s32 1, %s479_s11   ;;  %s689_s6 = smov %s463_s7 }
  0x4e   : > { %p14_p5 = scmp.ge.s32.totalorder %s17_s11, 4   ;;  %s690_s7 = smov %s467_s8 }
  0x4f   : > { %s691_s8 = smov %s554_s20  ;;  %s692_s9 = smov %s475_s10 }
  0x50   : > { %s693_s10 = smov %s695_s14  ;;  %16 = sbr.rel (!%p14_p5) target bundleno = 6 (0x6), region = 69 }
  0x55   :  { %224 = vsyncpa [#allocation3], 1 }
  0x56   :  { %226 = vsyncpa [#allocation3 + $0x1], 1 }
  0x57   :  { %227 = vsyncpa [#allocation4], 1 }
  0x58   :  { %229 = vsyncpa [#allocation4 + $0x1], 1 }

</bundles_post_ra>
